<compile_context>
chip_gen: v5e
topology: v5e:2x2
jax: 0.10.0
libtpu: 0.0.40
codegen_flags: <defaults>
</compile_context>

<pallas_src>
import functools

import jax
import jax.numpy as jnp
from jax import lax
from jax.experimental import pallas as pl
from jax.experimental.pallas import tpu as pltpu

_F32_MIN_NORMAL = 1.1754944e-38


def _l2norm_kernel(x_ref, w_ref, o_ref, *, eps):
    # x_ref: (C, T) block -- channels on sublanes, spatial positions lane-dense.
    x = x_ref[...].astype(jnp.float32)
    sq_sum = jnp.sum(x * x, axis=0, keepdims=True)            # (1, T): per-lane VPU adds
    if eps * eps >= _F32_MIN_NORMAL:
        # clamp(sqrt(s), eps) == sqrt(max(s, eps^2)) for s >= 0 -> one rsqrt on the EUP.
        inv_norm = lax.rsqrt(jnp.maximum(sq_sum, eps * eps))   # (1, T)
    else:
        # eps^2 would underflow to 0: keep the exact clamp, still only (1, T) work.
        inv_norm = 1.0 / jnp.maximum(jnp.sqrt(sq_sum), eps)
    # Weight read/broadcast per step is negligible: kernel is HBM-bound.
    w = w_ref[...].astype(jnp.float32)                         # (C, 1), lane-broadcast
    o_ref[...] = (x * inv_norm * w).astype(o_ref.dtype)


def _round_up(x, m):
    return ((x + m - 1) // m) * m


def _pick_t_hw(N, C, HW, itemsize):
    # VMEM bytes per (C x 1) lane-column of work:
    #   2x double-buffered input block + 2x output block (input dtype)
    #   + ~3 f32 intermediates (upcast x, x*x / scaled-output temps).
    bytes_per_elem = 4 * itemsize + 3 * 4
    # ~12 MiB of block footprint: fits v5e's 16 MiB default scoped-VMEM limit with
    # headroom and is well past the per-step-overhead knee on every generation.
    budget_bytes = 12 * 1024 * 1024
    t_hw = budget_bytes // (C * bytes_per_elem)
    t_hw = max((t_hw // 128) * 128, 128)
    # Never bigger than the 128-padded spatial extent.
    t_hw = min(t_hw, _round_up(HW, 128))
    # Guarantee a few grid steps (v7x megacore sharding + DMA/compute overlap),
    # but never go below one 128-lane tile.
    while N * pl.cdiv(HW, t_hw) < 4 and t_hw > 128:
        t_hw = max((t_hw // 2 // 128) * 128, 128)
    return t_hw


def l2norm_pallas(x_nchw, weight, eps=1e-10, t_hw=None):
    """L2Norm over the channel dim of an NCHW tensor. Returns same shape/dtype."""
    N, C, H, W = x_nchw.shape
    HW = H * W
    itemsize = jnp.dtype(x_nchw.dtype).itemsize

    # Keep NCHW: flatten spatial dims only (free reshape; no transpose, no pad).
    x3 = x_nchw.reshape(N, C, HW)
    w2d = weight.reshape(C, 1)

    if t_hw is None:
        t_hw = _pick_t_hw(N, C, HW, itemsize)

    grid = (N, pl.cdiv(HW, t_hw))

    # Explicit, footprint-sized VMEM limit so tile sizing is portable across the
    # different default scoped limits (16/32/32 MiB on v5e/v6e/v7x).
    block_bytes = C * t_hw * itemsize
    footprint = 4 * block_bytes + 3 * C * t_hw * 4 + C * 128 * 4
    vmem_limit = int(min(32 * 1024 * 1024,
                         max(16 * 1024 * 1024, footprint + (4 << 20))))

    out3 = pl.pallas_call(
        functools.partial(_l2norm_kernel, eps=float(eps)),
        out_shape=jax.ShapeDtypeStruct((N, C, HW), x_nchw.dtype),
        grid_spec=pltpu.PrefetchScalarGridSpec(
            num_scalar_prefetch=0,
            grid=grid,
            in_specs=[
                # N squeezed out; kernel sees (C, t_hw) with lane-dense last dim.
                # The last HW block is clipped by Pallas when HW % t_hw != 0.
                pl.BlockSpec((None, C, t_hw), lambda n, j: (n, 0, j)),
                # Weights: full (C, 1) block, same tile for every grid step.
                pl.BlockSpec((C, 1), lambda n, j: (0, 0)),
            ],
            out_specs=pl.BlockSpec((None, C, t_hw), lambda n, j: (n, 0, j)),
        ),
        compiler_params=pltpu.CompilerParams(
            dimension_semantics=("parallel", "parallel"),
            vmem_limit_bytes=vmem_limit),
    )(x3, w2d)

    return out3.reshape(N, C, H, W)


def l2norm_ref(x, weight, eps=1e-10):
    norm = jnp.maximum(jnp.sqrt(jnp.sum(x * x, axis=1, keepdims=True)), eps)
    return x / norm * weight.reshape(1, -1, 1, 1)


if __name__ == "__main__":
    key = jax.random.PRNGKey(0)
    scale = 20.0

    # Main test: small NCHW, HW a multiple of the lane tile.
    N, C, H, W = 2, 4, 16, 16
    x = jax.random.normal(key, (N, C, H, W), dtype=jnp.float32)
    # Deterministic parameter init, matching nn.Parameter(torch.ones(C) * scale).
    weight = jnp.ones((C,), dtype=jnp.float32) * scale

    out = jax.block_until_ready(l2norm_pallas(x, weight))
    ref = l2norm_ref(x, weight)
    assert out.shape == (N, C, H, W)
    assert jnp.allclose(out, ref, atol=1e-5, rtol=1e-5)

    # Edge-block test: HW not a multiple of 128 exercises the clipped last block
    # (replaces the old jnp.pad / output-slice path).
    N2, C2, H2, W2 = 2, 4, 13, 9
    x2 = jax.random.normal(jax.random.PRNGKey(0), (N2, C2, H2, W2), dtype=jnp.float32)
    out2 = jax.block_until_ready(l2norm_pallas(x2, weight))
    ref2 = l2norm_ref(x2, weight)
    assert out2.shape == (N2, C2, H2, W2)
    assert jnp.allclose(out2, ref2, atol=1e-5, rtol=1e-5)

    print("KERNEL_OK")
</pallas_src>

<mosaic_0001>
module attributes {stable_mosaic.version = 11 : i64} {
  func.func @_l2norm_kernel(%arg0: i32, %arg1: i32, %arg2: memref<1x4x128xf32, #tpu.memory_space<vmem>>, %arg3: memref<4x1xf32, #tpu.memory_space<vmem>>, %arg4: memref<1x4x128xf32, #tpu.memory_space<vmem>>) attributes {dimension_semantics = [#tpu.dimension_semantics<parallel>, #tpu.dimension_semantics<parallel>], iteration_bounds = array<i64: 2, 2>, scalar_prefetch = 0 : i64, scratch_operands = 0 : i64, tpu.core_type = #tpu.core_type<tc>, window_params = [{transform_indices = @transform_0, window_bounds = array<i64: 1, 4, 128>}, {pipeline_mode = #tpu.pipeline_mode<synchronous>, transform_indices = @transform_1, window_bounds = array<i64: 4, 1>}, {transform_indices = @transform_2, window_bounds = array<i64: 1, 4, 128>}]} {
    %c0 = arith.constant 0 : index
    %c0_0 = arith.constant 0 : index
    %c0_1 = arith.constant 0 : index
    %0 = vector.load %arg2[%c0, %c0_0, %c0_1] : memref<1x4x128xf32, #tpu.memory_space<vmem>>, vector<1x4x128xf32>
    %1 = vector.shape_cast %0 : vector<1x4x128xf32> to vector<4x128xf32>
    %2 = arith.mulf %1, %1 : vector<4x128xf32>
    %cst = arith.constant dense<0.000000e+00> : vector<128xf32>
    %3 = vector.multi_reduction <add>, %2, %cst [0] : vector<4x128xf32> to vector<128xf32>
    %4 = vector.shape_cast %3 : vector<128xf32> to vector<1x128xf32>
    %cst_2 = arith.constant 9.99999968E-21 : f32
    %5 = vector.broadcast %cst_2 : f32 to vector<1x128xf32>
    %6 = arith.maximumf %4, %5 : vector<1x128xf32>
    %7 = math.rsqrt %6 : vector<1x128xf32>
    %c0_3 = arith.constant 0 : index
    %c0_4 = arith.constant 0 : index
    %8 = vector.load %arg3[%c0_3, %c0_4] : memref<4x1xf32, #tpu.memory_space<vmem>>, vector<4x1xf32>
    %9 = vector.broadcast %7 : vector<1x128xf32> to vector<4x128xf32>
    %10 = arith.mulf %1, %9 : vector<4x128xf32>
    %11 = vector.broadcast %8 : vector<4x1xf32> to vector<4x128xf32>
    %12 = arith.mulf %10, %11 : vector<4x128xf32>
    %c0_5 = arith.constant 0 : index
    %c0_6 = arith.constant 0 : index
    %c0_7 = arith.constant 0 : index
    %13 = vector.load %arg4[%c0_5, %c0_6, %c0_7] : memref<1x4x128xf32, #tpu.memory_space<vmem>>, vector<1x4x128xf32>
    %14 = vector.shape_cast %13 : vector<1x4x128xf32> to vector<4x128xf32>
    %15 = vector.shape_cast %12 : vector<4x128xf32> to vector<1x4x128xf32>
    tpu.vector_store %arg4[%c0_5, %c0_6, %c0_7], %15 {strides = array<i32>} : memref<1x4x128xf32, #tpu.memory_space<vmem>>, vector<1x4x128xf32>,
    return
  }
  func.func @transform_0(%arg0: i32, %arg1: i32) -> (i32, i32, i32) {
    %c0_i32 = arith.constant 0 : i32
    %c0_i32_0 = arith.constant 0 : i32
    return %arg0, %c0_i32, %arg1 : i32, i32, i32
  }
  func.func @transform_1(%arg0: i32, %arg1: i32) -> (i32, i32) {
    %c0_i32 = arith.constant 0 : i32
    %c0_i32_0 = arith.constant 0 : i32
    %c0_i32_1 = arith.constant 0 : i32
    return %c0_i32, %c0_i32_0 : i32, i32
  }
  func.func @transform_2(%arg0: i32, %arg1: i32) -> (i32, i32, i32) {
    %c0_i32 = arith.constant 0 : i32
    %c0_i32_0 = arith.constant 0 : i32
    return %arg0, %c0_i32, %arg1 : i32, i32, i32
  }
}

</mosaic_0001>

<bundles_post_ra>
// kernel: tpu_custom_call.1
= control target key start
LH: loop header
LB: loop body
LE: loop exit
PB: predicated region body
PF: predicated region fallthrough
CT: control target
= control target key end

     0   :  { %7 = vsyncpa [#allocation3], 0  ;;  %s704_s0 = inlined_call_operand.hbm [shape: f32[2,4,256], index: 0, kind: input, shape index: {}]   ;;  %s705_s1 = inlined_call_operand.vmem [shape: f32[4,1], index: 1, kind: input, shape index: {}]   ;;  %s706_s2 = inlined_call_operand.hbm [shape: f32[2,4,256], index: 2, kind: output, shape index: {}]  }
   0x1   :  { %9 = vsyncpa [#allocation3 + $0x1], 0 }
   0x2   :  { %10 = vsyncpa [#allocation4], 0 }
   0x3   :  { %12 = vsyncpa [#allocation4 + $0x1], 0  ;;  %s555_s9 = smov 0   ;;  %s557_s10 = smov 0  }
   0x4   :  { %s559_s11 = smov 0   ;;  %s561_s12 = smov 0  }
   0x5   :  { %s563_s13 = smov 0   ;;  %s565_s14 = smov 0  }
   0x6   :  { %s567_s15 = smov 0   ;;  %s569_s16 = smov 0  }
   0x7 LB: > { %s312_s17 = sadd.s32 4294967295, %s537_s16   ;;  %s313_s18 = sadd.s32 4294967294, %s537_s16   ;;  %s537_s16 = sphi %s569_s16, %s18_s16   ;;  %s533_s15 = sphi %s567_s15, %s717_s15   ;;  %s529_s14 = sphi %s565_s14, %s716_s14   ;;  %s525_s13 = sphi %s563_s13, %s715_s13   ;;  %s521_s12 = sphi %s561_s12, %s714_s12   ;;  %s517_s11 = sphi %s559_s11, %s713_s11   ;;  %s513_s10 = sphi %s557_s10, %s712_s10   ;;  %s509_s9 = sphi %s555_s9, %s711_s9  }
   0x8   : > { %s27_s19 = sadd.s32 1, %s529_s14  ;;  %s30_s20 = sadd.s32 1, %s533_s15 }
   0x9   : > { %p28_p0 = scmp.ge.s32.totalorder %s27_s19, 2  ;;  %s39_s21 = sadd.s32 1, %s517_s11 }
   0xa   : > { %p46_p1 = scmp.ne.s32.totalorder %s517_s11, %s513_s10  ;;  %p47_p2 = scmp.eq.s32.totalorder %s537_s16, 0 }
   0xb   : > { %s719_s19 = smov (%p28_p0, %s27_s19), 0  ;;  %s721_s20 = smov (!%p28_p0, %s30_s20), %s533_s15 }
   0xc   : > { %s35_s22 = ssub.s32 %s529_s14, %s719_s19  ;;  %p608_p3 = por %p47_p2, %p46_p1 }
   0xd   : > { %p32_p4 = scmp.ge.s32.totalorder %s721_s20, 2  ;;  %p52_p5 = scmp.ne.s32.totalorder %s513_s10, %s509_s9 }
   0xe   : > { %p53_p6 = scmp.eq.s32.totalorder %s312_s17, 0  ;;  %p99_p7 = scmp.eq.s32.totalorder %s312_s17, 3 }
   0xf   : > { %s723_s20 = smov (%p32_p4, %s721_s20), 0  ;;  %p105_p10 = scmp.eq.s32.totalorder %s313_s18, 3 }
  0x10   : > { %p616_p8 = por %p53_p6, %p52_p5  ;;  %p620_p9 = por %p99_p7, %p46_p1 }
  0x11   : > { %s34_s26 = ssub.s32 %s533_s15, %s723_s20  ;;  %p626_p12 = por %p105_p10, %p52_p5 }
  0x12   : > { %s36_s27 = sor.u32 %s35_s22, %s34_s26  ;;  %p339_p13 = scmp.lt.s32.totalorder %s537_s16, 4 }
  0x13   : > { %p37_p11 = scmp.eq.s32.totalorder %s36_s27, 0  ;;  %s128_s29 = sand.u32 1, %s517_s11  }
  0x14   : > { %s316_s3 = sshll.u32 %s128_s29, 2  ;;  %s317_s4 = sshll.u32 %s533_s15, 1 }
  0x15   : > { %s633_s30 = scalar_select %p37_p11, %s517_s11, %s39_s21  }
  0x16   : > { %s136_s5 = sadd.s32 %s529_s14, %s317_s4  ;;  %s132_s6 = scalar_lea.vmem [#allocation2], %s316_s3 }
  0x17   : > { %s142_s7 = sshll.u32 %s132_s6, 4  ;;  %s318_s8 = sshll.u32 %s136_s5, 2  ;;  %s143_s7 = int_to_ptr.vmem [resolvable:$true] %s142_s7 }
  0x18   : > { %s138_s22 = scalar_lea.hbm %s704_s0, %s318_s8  ;;  %p332_p0 = pnand %p339_p13, %p608_p3 }
  0x19   : > { %s140_s26 = sshll.u32 %s138_s22, 4  ;;  %p319_p1 = scmp.ge.s32.totalorder %s537_s16, 1  ;;  %s141_s26 = int_to_ptr.hbm [resolvable:$true] %s140_s26 }
  0x1a   : > { %s129_s27 = scalar_lea.sflag [#allocation3], %s128_s29  ;;  %p147_p2 = scmp.lt.s32.totalorder %s537_s16, 5 }
  0x1b   : > { %334 = dma.hbm_to_vmem [thread:$0]  (!%p332_p0), %s141_s26, 64, %s143_s7, %s129_s27  }
  0x1c   : > { %p148_p4 = pnand %p319_p1, %p147_p2 }
  0x1d   : > { %s645_s21 = sand.u32 (!%p148_p4), 1, %s513_s10  }
  0x1e   : > { %151 = sbr.rel (%p148_p4) target bundleno = 158 (0x9e), region = 28  ;;  %s320_s3 = sshll.u32 (!%p148_p4), %s645_s21, 2 }
  0x1f   : > { %s154_s4 = scalar_lea.sflag (!%p148_p4), [#allocation3], %s645_s21  ;;  %s157_s23 = scalar_lea.vmem (!%p148_p4), [#allocation2], %s320_s3 }
  0x23   : > { %500 = dma.done.wait (%p616_p8), %s154_s4, 64  }
  0x24   : > { %502 = vsyncadd (%p616_p8), %s154_s4, 4294967232  ;;  %v539_v0 = vmov 0   ;;  %v200_v1 = vld [vmem:[%s705_s1] sm:$0xf]  ;;  %vm181_vm0 = vcmask 1043456   ;;  %s323_s24 = sshll.u32 %s525_s13, 1 }
  0x25   : > { %406 = vset.pattern.permute.xlu0 %v539_v0  ;;  %v179_v2 = vld [vmem:[%s157_s23] sm:$0xf]  ;;  %s220_s6 = sadd.s32 %s521_s12, %s323_s24  ;;  %s178_s22 = scalar_lea.vmem [#allocation5], %s320_s3 }
  0x26   : > { %204 = vperm.xlu0 %406, %v200_v1   ;;  %v180_v3 = vmul.f32 %v179_v2, %v179_v2  ;;  %s324_s7 = sshll.u32 %s220_s6, 2  ;;  %s224_s26 = sshll.u32 %s178_s22, 4  ;;  %s225_s26 = int_to_ptr.vmem [resolvable:$true] %s224_s26 }
  0x27   : > { %s222_s18 = scalar_lea.hbm %s706_s2, %s324_s7  ;;  %s210_s12 = scalar_lea.sflag [#allocation4], %s645_s21 }
  0x28   : > { %v182_v4 = vsel %vm181_vm0, %v180_v3, 0.0  ;;  %s226_s27 = sshll.u32 %s222_s18, 4  ;;  %s459_s5 = scalar_lea.hbm %s706_s2, 16  ;;  %s227_s27 = int_to_ptr.hbm [resolvable:$true] %s226_s27 }
  0x29   : > { %v183_v5 = vrot.slane %v182_v4, 4  ;;  %s453_s13 = sshra.s32 %s227_s27, 4  ;;  %s454_s13 = int_to_ptr.hbm [resolvable:$true] %s453_s13 }
  0x2a   : > { %s455_s4 = scalar_lea.hbm %s454_s13, 4  ;;  %p460_p7 = scmp.lt.s32.totalorder %s454_s13, %s706_s2 }
  0x2b   : > { %v184_v6 = vadd.f32 %v183_v5, %v182_v4  ;;  %p456_p3 = scmp.ne.s32.totalorder %s454_s13, %s455_s4  ;;  %p461_p8 = scmp.lt.s32.totalorder %s459_s5, %s455_s4 }
  0x2d   : > { %v185_v7 = vrot.slane %v184_v6, 2  ;;  %p457_p5 = pnand %p456_p3, %p620_p9  ;;  %p462_p10 = por %p461_p8, %p460_p7 }
  0x2f   : > { %v186_v8 = vadd.f32 %v185_v7, %v184_v6  ;;  %p458_p6 = pneg %p457_p5 }
  0x31   : > { %v187_v9 = vrot.slane %v186_v8, 1  ;;  %p463_p11 = pnand %p462_p10, %p458_p6 }
  0x33   : > { %v188_v10 = vadd.f32 %v187_v9, %v186_v8 }
  0x35   : > { %v189_v11 = vmax.f32 %v188_v10, 1e-20 }
  0x37   : > { %407 = vrsqrt.f32 %v189_v11  ;;  %vm196_vm1 = vweird.f32 %v189_v11 }
  0x3d   : > { %v408_v12 = vpop.eup %407 }
  0x3e   : > { %v191_v13 = vmul.f32 %v408_v12, %v189_v11  ;;  %vm197_vm2 = vweird.f32 %v408_v12 }
  0x3f   : > { %vm198_vm3 = vmor %vm196_vm1, %vm197_vm2 }
  0x40   : > { %v192_v14 = vmul.f32 %v408_v12, %v191_v13 }
  0x42   : > { %v193_v15 = vmul.f32 0.5, %v192_v14 }
  0x44   : > { %v194_v16 = vsub.f32 1.5, %v193_v15 }
  0x46   : > { %v195_v17 = vmul.f32 %v408_v12, %v194_v16 }
  0x48   : > { %v199_v18 = vsel %vm198_vm3, %v408_v12, %v195_v17 }
  0x49   : > { %v201_v19 = vmul.f32 %v199_v18, %v179_v2 }
  0x98   : > { %v205_v20 = vpop.permute.xlu0 %204 }
  0x99   : > { %v207_v21 = vmul.f32 %v205_v20, %v201_v19 }
  0x9b   : > { %208 = vst [vmem:[%s178_s22] sm:$0xf] %v207_v21 }
  0x9c   : > { %466 = shalt.err (!%p463_p11)
}
  0x9d   : > { %329 = dma.vmem_to_hbm [thread:$0]  (%p620_p9), %s225_s26, 64, %s227_s27, %s210_s12  }
  0x9e PF: > { %p340_p13 = scmp.ge.s32.totalorder %s537_s16, 2  ;;  %s238_s21 = sand.u32 1, %s509_s9  }
  0x9f   : > { %s239_s6 = scalar_lea.sflag [#allocation4], %s238_s21 }
  0xa0   : > { %p336_p0 = pnand %p340_p13, %p626_p12 }
  0xa2   : > { %p337_p1 = pneg %p336_p0 }
  0xa4   : > { %504 = dma.done.wait (%p337_p1), %s239_s6, 64  }
  0xa5   : > { %506 = vsyncadd (%p337_p1), %s239_s6, 4294967232  ;;  %s18_s16 = sadd.s32 1, %s537_s16   ;;  %s711_s9 = smov %s513_s10 }
  0xa6   : > { %p15_p2 = scmp.ge.s32.totalorder %s18_s16, 6   ;;  %s712_s10 = smov %s517_s11 }
  0xa7   : > { %s713_s11 = smov %s633_s30  ;;  %s714_s12 = smov %s529_s14 }
  0xa8   : > { %s715_s13 = smov %s533_s15  ;;  %s716_s14 = smov %s719_s19 }
  0xa9   : > { %s717_s15 = smov %s723_s20  ;;  %17 = sbr.rel (!%p15_p2) target bundleno = 7 (0x7), region = 73 }
  0xae   :  { %245 = vsyncpa [#allocation3], 1 }
  0xaf   :  { %247 = vsyncpa [#allocation3 + $0x1], 1 }
  0xb0   :  { %248 = vsyncpa [#allocation4], 1 }
  0xb1   :  { %250 = vsyncpa [#allocation4 + $0x1], 1 }

</bundles_post_ra>
